<compile_context>
chip_gen: v7x
topology: tpu7x:2x2x1
jax: 0.10.0
libtpu: 0.0.40
codegen_flags: <defaults>
</compile_context>

<pallas_src>
import functools

import jax
import jax.numpy as jnp
from jax.experimental import pallas as pl
from jax.experimental.pallas import tpu as pltpu


# ----------------------------------------------------------------------------
# Kernels
# ----------------------------------------------------------------------------
def _resident_kernel(x_ref, w_ref, b_ref, o_ref, *, merge: str, scale: float,
                     hidden: int):
    """Whole-weight-resident path: one row tile per grid step, no K loop.

    x_ref : (TM, H)   full rows of the input
    w_ref : (H, H)    transposed Linear weight (in, out), VMEM-resident
    b_ref : (1, H)    Linear bias (resident)
    o_ref : (TM, H) or (TM, 2H) output rows
    """
    h = jnp.dot(x_ref[...], w_ref[...], preferred_element_type=jnp.float32)
    h = h + b_ref[...].astype(jnp.float32)

    if merge == "add":
        xf = x_ref[...].astype(jnp.float32)
        o_ref[...] = (xf + scale * h).astype(o_ref.dtype)
    elif merge == "gate":
        xf = x_ref[...].astype(jnp.float32)
        # XLU cross-lane reduce + EUP sigmoid: hidden under the matmul.
        g = jax.nn.sigmoid(jnp.mean(h, axis=-1, keepdims=True))
        o_ref[...] = (xf * (1.0 - g) + h * g).astype(o_ref.dtype)
    else:  # concat: both halves written from the kernel (no wrapper copy).
        o_ref[:, :hidden] = x_ref[...]
        o_ref[:, hidden:] = h.astype(o_ref.dtype)


def _tiled_kernel(x_ref, w_ref, b_ref, o_ref, acc_ref, *maybe_xres,
                  merge: str, scale: float, hidden: int, tk: int, n_k: int):
    """K-tiled path for large hidden.

    x_ref : (TM, TK)   K-slice of the input rows (matmul LHS)
    w_ref : (TK, H)    K-slice of the transposed weight (plain [M,K]x[K,N])
    b_ref : (1, H)     bias (resident)
    o_ref : (TM, H) / (TM, 2H)
    acc_ref : (TM, H) f32 scratch accumulator
    maybe_xres : (TM, H) x-dtype scratch (only for 'add'/'gate'); the streaming
                 x K-slices are copied here so x is read from HBM only once.
    """
    xres_ref = maybe_xres[0] if maybe_xres else None
    k = pl.program_id(1)

    @pl.when(k == 0)
    def _():
        acc_ref[...] = jnp.zeros_like(acc_ref)

    acc_ref[...] += jnp.dot(x_ref[...], w_ref[...],
                            preferred_element_type=jnp.float32)

    start = pl.multiple_of(k * tk, tk)
    if merge == "concat":
        # x half of the output; the output block stays resident across K.
        o_ref[:, pl.ds(start, tk)] = x_ref[...]
    else:
        xres_ref[:, pl.ds(start, tk)] = x_ref[...]

    @pl.when(k == n_k - 1)
    def _():
        h = acc_ref[...] + b_ref[...].astype(jnp.float32)
        if merge == "add":
            xf = xres_ref[...].astype(jnp.float32)
            o_ref[...] = (xf + scale * h).astype(o_ref.dtype)
        elif merge == "gate":
            xf = xres_ref[...].astype(jnp.float32)
            g = jax.nn.sigmoid(jnp.mean(h, axis=-1, keepdims=True))
            o_ref[...] = (xf * (1.0 - g) + h * g).astype(o_ref.dtype)
        else:
            o_ref[:, hidden:] = h.astype(o_ref.dtype)


# ----------------------------------------------------------------------------
# Wrapper
# ----------------------------------------------------------------------------
def _round_up(x: int, m: int) -> int:
    return ((x + m - 1) // m) * m


def _sublane_multiple(dtype) -> int:
    itemsize = jnp.dtype(dtype).itemsize
    return {4: 8, 2: 16, 1: 32}.get(itemsize, 8)


def _pick_tile(dim: int, preferred: int, multiple: int) -> int:
    """Largest tile <= preferred, a multiple of `multiple`, dividing `dim`;
    falls back to the full dim (always a legal single block)."""
    if dim <= preferred:
        return dim
    t = (preferred // multiple) * multiple
    while t >= multiple:
        if dim % t == 0:
            return t
        t -= multiple
    return dim


def _vmem_capacity_bytes() -> int:
    try:
        cap = int(pltpu.get_tpu_info().vmem_capacity_bytes)
        if cap > 0:
            return cap
    except Exception:  # pragma: no cover - info query unavailable
        pass
    return 64 * 1024 * 1024  # conservative: v7x per-core VMEM


def residual_module_forward(x, weight, bias, *, merge: str = "add",
                            scale: float = 1.0):
    """ResidualModule.forward with inner = Linear(hidden, hidden).

    x:      (batch, seq, hidden)
    weight: (hidden, hidden)  -- PyTorch Linear convention (out, in)
    bias:   (hidden,)
    """
    if merge not in ("add", "concat", "gate"):
        raise ValueError(f"Unknown merge mode: {merge}")

    batch, seq, hidden = x.shape
    n = batch * seq
    dtype = x.dtype
    itemsize = jnp.dtype(dtype).itemsize
    sub = _sublane_multiple(dtype)
    out_h = 2 * hidden if merge == "concat" else hidden

    # One amortized HBM-side transpose: (out, in) -> (in, out).
    wt = weight.T
    b2 = bias.reshape(1, hidden)

    cap = _vmem_capacity_bytes()
    budget = cap - cap // 4            # ~25% headroom for compiler scratch.

    weight_bytes = hidden * hidden * itemsize
    resident = 2 * weight_bytes <= budget // 2   # weight (double-buffer-safe)

    tk = hidden
    if resident:
        avail = budget - 2 * weight_bytes - 2 * hidden * itemsize
        tm_cap = avail // max(1, 2 * (hidden + out_h) * itemsize)
    else:
        # ~8 MiB weight block per K step (fewer K steps -> fewer accumulator
        # read-modify-writes and less grid-step overhead).
        tk = _pick_tile(hidden,
                        max(128, (8 * 1024 * 1024) // max(1, hidden * itemsize)),
                        128)
        per_row = (2 * tk * itemsize        # x K-slices (double-buffered)
                   + 2 * out_h * itemsize   # output block
                   + hidden * 4)            # f32 accumulator
        if merge != "concat":
            per_row += hidden * itemsize    # xres scratch
        avail = budget - 2 * tk * hidden * itemsize - 2 * hidden * itemsize
        tm_cap = avail // max(1, per_row)

    tm_cap = max(sub, (int(tm_cap) // sub) * sub)
    tm = int(min(1024, tm_cap, _round_up(n, sub)))
    tm = max(sub, (tm // sub) * sub)
    n_pad = _round_up(n, tm)

    x2 = x.reshape(n, hidden)
    if n_pad != n:
        # Pad rows instead of degrading to tiny/huge tiles; padded rows are
        # computed and sliced away (cheap relative to keeping the tile size).
        x2 = jnp.pad(x2, ((0, n_pad - n), (0, 0)))
    n_rows = n_pad // tm

    if resident:
        kernel = functools.partial(_resident_kernel, merge=merge, scale=scale,
                                   hidden=hidden)
        grid = (n_rows,)
        in_specs = [
            pl.BlockSpec((tm, hidden), lambda i: (i, 0)),       # x rows
            pl.BlockSpec((hidden, hidden), lambda i: (0, 0)),   # W^T resident
            pl.BlockSpec((1, hidden), lambda i: (0, 0)),        # bias resident
        ]
        out_specs = pl.BlockSpec((tm, out_h), lambda i: (i, 0))
        scratch_shapes = []
        dim_sem = ("parallel",)
        footprint = (2 * tm * hidden + 2 * hidden * hidden + 2 * hidden
                     + 2 * tm * out_h) * itemsize
        weight_reads = 1
    else:
        n_k = hidden // tk
        kernel = functools.partial(_tiled_kernel, merge=merge, scale=scale,
                                   hidden=hidden, tk=tk, n_k=n_k)
        grid = (n_rows, n_k)
        in_specs = [
            pl.BlockSpec((tm, tk), lambda i, k: (i, k)),        # x K-slices
            pl.BlockSpec((tk, hidden), lambda i, k: (k, 0)),    # W^T K-slices
            pl.BlockSpec((1, hidden), lambda i, k: (0, 0)),     # bias resident
        ]
        out_specs = pl.BlockSpec((tm, out_h), lambda i, k: (i, 0))
        scratch_shapes = [pltpu.VMEM((tm, hidden), jnp.float32)]
        if merge != "concat":
            scratch_shapes.append(pltpu.VMEM((tm, hidden), dtype))
        dim_sem = ("parallel", "arbitrary")
        footprint = (2 * tm * tk * itemsize + 2 * tk * hidden * itemsize
                     + 2 * hidden * itemsize + 2 * tm * out_h * itemsize
                     + tm * hidden * 4)
        if merge != "concat":
            footprint += tm * hidden * itemsize
        weight_reads = n_rows

    # Generation-aware VMEM limit: actual footprint + margin, capped below the
    # physical per-core capacity (leave headroom for internal scratch).
    vmem_limit = int(min(cap - cap // 8,
                         max(32 * 1024 * 1024, footprint + footprint // 4)))

    flops = 2 * n_pad * hidden * hidden
    bytes_accessed = (n_pad * hidden * itemsize                # x (read once)
                      + weight_bytes * weight_reads
                      + hidden * itemsize
                      + n_pad * out_h * itemsize)

    out2 = pl.pallas_call(
        kernel,
        out_shape=jax.ShapeDtypeStruct((n_pad, out_h), dtype),
        grid=grid,
        in_specs=in_specs,
        out_specs=out_specs,
        scratch_shapes=scratch_shapes,
        compiler_params=pltpu.CompilerParams(
            dimension_semantics=dim_sem,
            vmem_limit_bytes=vmem_limit),
        cost_estimate=pl.CostEstimate(
            flops=flops,
            transcendentals=n_pad if merge == "gate" else 0,
            bytes_accessed=bytes_accessed),
    )(x2, wt, b2)

    if n_pad != n:
        out2 = out2[:n]
    return out2.reshape(batch, seq, out_h)


# ----------------------------------------------------------------------------
# Pure-JAX reference (PyTorch semantics)
# ----------------------------------------------------------------------------
def _reference(x, weight, bias, *, merge: str, scale: float):
    h = jnp.einsum("bsd,od->bso", x, weight) + bias
    if merge == "add":
        return x + scale * h
    if merge == "concat":
        return jnp.concatenate([x, h], axis=-1)
    if merge == "gate":
        g = jax.nn.sigmoid(jnp.mean(h, axis=-1, keepdims=True))
        return x * (1.0 - g) + h * g
    raise ValueError(merge)


if __name__ == "__main__":
    key = jax.random.PRNGKey(0)
    kx, kw, kb = jax.random.split(key, 3)

    batch, seq, hidden = 2, 8, 32
    x = jax.random.normal(kx, (batch, seq, hidden), dtype=jnp.float32)
    # Deterministic synthetic Linear(hidden, hidden) parameters (PyTorch layout).
    weight = jax.random.normal(kw, (hidden, hidden), dtype=jnp.float32) * 0.05
    bias = jax.random.normal(kb, (hidden,), dtype=jnp.float32) * 0.01

    ok = True
    for merge in ("add", "concat", "gate"):
        scale = 0.5 if merge == "add" else 1.0
        out = residual_module_forward(x, weight, bias, merge=merge, scale=scale)
        out = jax.block_until_ready(out)
        ref = _reference(x, weight, bias, merge=merge, scale=scale)
        if not jnp.allclose(out, ref, atol=1e-5, rtol=1e-5):
            ok = False
            print(f"MISMATCH for merge={merge}: "
                  f"max_err={float(jnp.max(jnp.abs(out - ref)))}")

    if ok:
        print("KERNEL_OK")
</pallas_src>

<mosaic_0001>
module attributes {stable_mosaic.version = 11 : i64} {
  func.func @_resident_kernel(%arg0: i32, %arg1: memref<16x32xf32, #tpu.memory_space<vmem>>, %arg2: memref<32x32xf32, #tpu.memory_space<vmem>>, %arg3: memref<1x32xf32, #tpu.memory_space<vmem>>, %arg4: memref<16x32xf32, #tpu.memory_space<vmem>>) attributes {dimension_semantics = [#tpu.dimension_semantics<parallel>], iteration_bounds = array<i64: 1>, scalar_prefetch = 0 : i64, scratch_operands = 0 : i64, tpu.core_type = #tpu.core_type<tc>, window_params = [{transform_indices = @transform_0, window_bounds = array<i64: 16, 32>}, {pipeline_mode = #tpu.pipeline_mode<synchronous>, transform_indices = @transform_1, window_bounds = array<i64: 32, 32>}, {pipeline_mode = #tpu.pipeline_mode<synchronous>, transform_indices = @transform_2, window_bounds = array<i64: 1, 32>}, {transform_indices = @transform_3, window_bounds = array<i64: 16, 32>}]} {
    %c0 = arith.constant 0 : index
    %c0_0 = arith.constant 0 : index
    %0 = vector.load %arg1[%c0, %c0_0] : memref<16x32xf32, #tpu.memory_space<vmem>>, vector<16x32xf32>
    %c0_1 = arith.constant 0 : index
    %c0_2 = arith.constant 0 : index
    %1 = vector.load %arg2[%c0_1, %c0_2] : memref<32x32xf32, #tpu.memory_space<vmem>>, vector<32x32xf32>
    %cst = arith.constant dense<0.000000e+00> : vector<16x32xf32>
    %2 = tpu.matmul %0, %1, %cst {dimension_numbers = #tpu.dot_dimension_numbers<[1], [0], [0], [1], [0, 0, 1, 1], [], []>} : vector<16x32xf32>, vector<32x32xf32>, vector<16x32xf32> -> vector<16x32xf32>
    %c0_3 = arith.constant 0 : index
    %c0_4 = arith.constant 0 : index
    %3 = vector.load %arg3[%c0_3, %c0_4] : memref<1x32xf32, #tpu.memory_space<vmem>>, vector<1x32xf32>
    %4 = vector.broadcast %3 : vector<1x32xf32> to vector<16x32xf32>
    %5 = arith.addf %2, %4 : vector<16x32xf32>
    %c0_5 = arith.constant 0 : index
    %c0_6 = arith.constant 0 : index
    %6 = vector.load %arg1[%c0_5, %c0_6] : memref<16x32xf32, #tpu.memory_space<vmem>>, vector<16x32xf32>
    %cst_7 = arith.constant 5.000000e-01 : f32
    %7 = vector.broadcast %cst_7 : f32 to vector<16x32xf32>
    %8 = arith.mulf %7, %5 : vector<16x32xf32>
    %9 = arith.addf %6, %8 : vector<16x32xf32>
    %c0_8 = arith.constant 0 : index
    %c0_9 = arith.constant 0 : index
    %10 = vector.load %arg4[%c0_8, %c0_9] : memref<16x32xf32, #tpu.memory_space<vmem>>, vector<16x32xf32>
    tpu.vector_store %arg4[%c0_8, %c0_9], %9 {strides = array<i32>} : memref<16x32xf32, #tpu.memory_space<vmem>>, vector<16x32xf32>,
    return
  }
  func.func @transform_0(%arg0: i32) -> (i32, i32) {
    %c0_i32 = arith.constant 0 : i32
    %c0_i32_0 = arith.constant 0 : i32
    return %arg0, %c0_i32 : i32, i32
  }
  func.func @transform_1(%arg0: i32) -> (i32, i32) {
    %c0_i32 = arith.constant 0 : i32
    %c0_i32_0 = arith.constant 0 : i32
    %c0_i32_1 = arith.constant 0 : i32
    return %c0_i32, %c0_i32_0 : i32, i32
  }
  func.func @transform_2(%arg0: i32) -> (i32, i32) {
    %c0_i32 = arith.constant 0 : i32
    %c0_i32_0 = arith.constant 0 : i32
    %c0_i32_1 = arith.constant 0 : i32
    return %c0_i32, %c0_i32_0 : i32, i32
  }
  func.func @transform_3(%arg0: i32) -> (i32, i32) {
    %c0_i32 = arith.constant 0 : i32
    %c0_i32_0 = arith.constant 0 : i32
    return %arg0, %c0_i32 : i32, i32
  }
}

</mosaic_0001>

<bundles_post_ra>
// kernel: tpu_custom_call.1
= control target key start
LH: loop header
LB: loop body
LE: loop exit
PB: predicated region body
PF: predicated region fallthrough
CT: control target
= control target key end

     0   :  { %8 = vsyncpa [#allocation3], 0  ;;  %s344_s0 = inlined_call_operand.hbm [shape: f32[16,32], index: 0, kind: input, shape index: {}]   ;;  %s345_s1 = inlined_call_operand.hbm [shape: f32[32,32], index: 1, kind: input, shape index: {}]   ;;  %s346_s2 = inlined_call_operand.vmem [shape: f32[1,32], index: 2, kind: input, shape index: {}]   ;;  %s347_s3 = inlined_call_operand.hbm [shape: f32[16,32], index: 3, kind: output, shape index: {}]  }
   0x1   :  { %9 = vsyncpa [#allocation6], 0 }
   0x2   :  { %10 = vsyncpa [#allocation4], 0  ;;  %s267_s12 = smov [#allocation2]   ;;  %s195_s16 = scalar_lea.hbm %s344_s0, 256 }
   0x3   :  { %s16_s13 = sshll.u32 %s267_s12, 4  ;;  %p196_p0 = scmp.ne.s32.totalorder %s344_s0, %s195_s16  ;;  %s17_s13 = int_to_ptr.vmem [resolvable:$true] %s16_s13 }
   0x4   :  { %p199_p1 = scmp.lt.u32.totalorder %s195_s16, %s344_s0 }
   0x6   :  { %p201_p2 = pnand %p199_p1, %p196_p0 }
   0x8   :  { %204 = shalt.err (!%p201_p2)
}
   0x9   :  { %s205_s21 = scalar_lea.vmem %s17_s13, 256  ;;  %p210_p4 = scmp.lt.s32.totalorder %s17_s13, %s17_s13 }
   0xa   :  { %p206_p3 = scmp.ne.s32.totalorder %s17_s13, %s205_s21  ;;  %p211_p5 = scmp.lt.s32.totalorder %s205_s21, %s205_s21 }
   0xc   :  { %p212_p6 = por %p211_p5, %p210_p4 }
   0xe   :  { %p213_p7 = pnand %p212_p6, %p206_p3 }
  0x10   :  { %216 = shalt.err (!%p213_p7)
}
  0x11   :  { %s268_s22 = smov 128   ;;  %s269_s23 = smov 8  }
  0x12   :  { %22 = dma.hbm_to_vmem [thread:$0]  %s344_s0, 256, %s17_s13, [#allocation3], %s268_s22, %s268_s22, %s269_s23  }
  0x13   :  { %s270_s26 = smov [#allocation5]   ;;  %s217_s30 = scalar_lea.hbm %s345_s1, 512 }
  0x14   :  { %s28_s27 = sshll.u32 %s270_s26, 4  ;;  %p218_p8 = scmp.ne.s32.totalorder %s345_s1, %s217_s30  ;;  %s29_s27 = int_to_ptr.vmem [resolvable:$true] %s28_s27 }
  0x15   :  { %p221_p9 = scmp.lt.u32.totalorder %s217_s30, %s345_s1 }
  0x17   :  { %p223_p10 = pnand %p221_p9, %p218_p8 }
  0x19   :  { %226 = shalt.err (!%p223_p10)
}
  0x1a   :  { %s227_s8 = scalar_lea.vmem %s29_s27, 512  ;;  %p232_p12 = scmp.lt.s32.totalorder %s29_s27, %s29_s27 }
  0x1b   :  { %p228_p11 = scmp.ne.s32.totalorder %s29_s27, %s227_s8  ;;  %p233_p13 = scmp.lt.s32.totalorder %s227_s8, %s227_s8 }
  0x1d   :  { %p234_p0 = por %p233_p13, %p232_p12 }
  0x1f   :  { %p235_p1 = pnand %p234_p0, %p228_p11 }
  0x21   :  { %238 = shalt.err (!%p235_p1)
}
  0x22   :  { %34 = dma.hbm_to_vmem [thread:$0]  %s345_s1, 512, %s29_s27, [#allocation6], %s268_s22, %s268_s22, %s269_s23  }
  0x23   :  { %261 = dma.done.wait [#allocation3], 256  }
  0x24   :  { %262 = vsyncadd [#allocation3], 4294967040 }
  0x25   :  { %263 = dma.done.wait [#allocation6], 512  }
  0x26   :  { %264 = vsyncadd [#allocation6], 4294966784  ;;  %vm56_vm0 = vcmask 261120   ;;  %v45_v0 = vld [vmem:[#allocation5] sm:$0xff]  ;;  %v46_v1 = vld [vmem:[#allocation5 + $0x8] sm:$0xff]  ;;  %s271_s11 = smov [#allocation7]  }
  0x27   :  { %v47_v2 = vld [vmem:[#allocation5 + $0x10] sm:$0xff]  ;;  %v182_v3 = vpack.c.bf16 %v46_v1, %v45_v0  ;;  %v48_v4 = vld [vmem:[#allocation5 + $0x18] sm:$0xff]  ;;  %s149_s12 = sshll.u32 %s271_s11, 4  ;;  %s150_s12 = int_to_ptr.vmem [resolvable:$true] %s149_s12 }
  0x28   :  { %v43_v5 = vld [vmem:[#allocation2] sm:$0xff]  ;;  %v186_v6 = vpack.c.bf16 %v48_v4, %v47_v2  ;;  %v44_v7 = vld [vmem:[#allocation2 + $0x8] sm:$0xff]  ;;  %s239_s13 = scalar_lea.vmem %s150_s12, 256  ;;  %p244_p3 = scmp.lt.s32.totalorder %s150_s12, %s150_s12 }
  0x29   :  { %179 = vmatprep.mubr.msk.f32.mxu0 %vm56_vm0, %v43_v5  ;;  %183 = vmatprep.subr.bf16.mxu0 %v182_v3  ;;  %v162_v8 = vld [vmem:[%s346_s2] ss:$0 sm:$0xff]  ;;  %p240_p2 = scmp.ne.s32.totalorder %s150_s12, %s239_s13  ;;  %p245_p4 = scmp.lt.s32.totalorder %s239_s13, %s239_s13 }
  0x2a   :  { %185 = vmatpush3.bf16.msra.mxu0 %v182_v3 }
  0x2b   :  { %187 = vmatprep.subr.bf16.mxu0 %v186_v6  ;;  %p246_p5 = por %p245_p4, %p244_p3 }
  0x2d   :  { %p247_p6 = pnand %p246_p5, %p240_p2 }
  0x2e   :  { %189 = vmatpush3.bf16.msra.mxu0 %v186_v6 }
  0x31   :  { %180 = vmatmul.mubr.msk.f32.vlgmr.msra.gmra.mrb[0].mxu0 %vm56_vm0, %v44_v7 }
 0x104   :  { %v181_v9 = vpop.f32.mrb[0].mxu0 }
 0x105   :  { %v135_v10 = vadd.f32 %v181_v9, %v162_v8  ;;  %v129_v11 = vpop.f32.mrb[1].mxu0 }
 0x106   :  { %v130_v12 = vadd.f32 %v162_v8, %v129_v11 }
 0x107   :  { %v139_v13 = vmul.f32 0.5, %v135_v10 }
 0x108   :  { %v138_v14 = vmul.f32 0.5, %v130_v12 }
 0x109   :  { %v141_v15 = vadd.f32 %v139_v13, %v44_v7 }
 0x10a   :  { %v140_v16 = vadd.f32 %v138_v14, %v43_v5 }
 0x10b   :  { %143 = vst.msk [vmem:[#allocation7 + $0x8] sm:$0xff] %vm56_vm0, %v141_v15 }
 0x10c   :  { %142 = vst.msk [vmem:[#allocation7] sm:$0xff] %vm56_vm0, %v140_v16 }
 0x10d   :  { %250 = shalt.err (!%p247_p6)
}
 0x10e   :  { %s251_s15 = scalar_lea.hbm %s347_s3, 256 }
 0x10f   :  { %p252_p7 = scmp.ne.s32.totalorder %s347_s3, %s251_s15  ;;  %p255_p8 = scmp.lt.u32.totalorder %s251_s15, %s347_s3 }
 0x111   :  { %p257_p9 = pnand %p255_p8, %p252_p7 }
 0x113   :  { %260 = shalt.err (!%p257_p9)
}
 0x114   :  { %155 = dma.vmem_to_hbm [thread:$0]  %s150_s12, 256, %s347_s3, [#allocation4], %s268_s22, %s268_s22, %s269_s23  }
 0x115   :  { %265 = dma.done.wait [#allocation4], 256  }
 0x116   :  { %266 = vsyncadd [#allocation4], 4294967040 }
 0x117   :  { %159 = vsyncpa [#allocation3], 1 }
 0x118   :  { %160 = vsyncpa [#allocation6], 1 }
 0x119   :  { %161 = vsyncpa [#allocation4], 1 }

</bundles_post_ra>
